<compile_context>
chip_gen: v6e
topology: v6e:2x2x1
jax: 0.10.0
libtpu: 0.0.40
codegen_flags: <defaults>
</compile_context>

<pallas_src>
import functools

import jax
import jax.numpy as jnp
from jax.experimental import pallas as pl
from jax.experimental.pallas import tpu as pltpu


def _masked_avg_kernel(x_ref, m_ref, inv_ref, o_ref, acc_ref, *, seq_len, block_s, tail):
    # x_ref:   (bB, bS, bH)  input tile (native dtype)
    # m_ref:   (bB, bS, 1)   mask tile in x's dtype (1 keep / 0 drop)
    # inv_ref: (bB, 1)       f32 reciprocal of the per-row valid count
    # o_ref:   (bB, bH)      output tile
    # acc_ref: (bB, bH)      f32 accumulator (resident across the S grid axis)
    k = pl.program_id(2)

    @pl.when(k == 0)
    def _():
        acc_ref[...] = jnp.zeros_like(acc_ref)

    # Mask multiply in the input dtype; accumulate in f32.
    prod = (x_ref[...] * m_ref[...]).astype(jnp.float32)
    if tail:
        # Last S block may read past the array: select (not multiply) the valid rows so
        # NaN/Inf garbage in the out-of-bounds region cannot poison the accumulator.
        row = jax.lax.broadcasted_iota(jnp.int32, (1, block_s, 1), 1)
        prod = jnp.where((k * block_s + row) < seq_len, prod, 0.0)
    acc_ref[...] += jnp.sum(prod, axis=1)

    @pl.when(k == pl.num_programs(2) - 1)
    def _():
        o_ref[...] = (acc_ref[...] * inv_ref[...]).astype(o_ref.dtype)


def _unmasked_avg_kernel(x_ref, o_ref, acc_ref, *, inv_s, seq_len, block_s, tail):
    # Fast path: no mask stream, scale by the trace-time constant 1/S.
    k = pl.program_id(2)

    @pl.when(k == 0)
    def _():
        acc_ref[...] = jnp.zeros_like(acc_ref)

    xf = x_ref[...].astype(jnp.float32)
    if tail:
        row = jax.lax.broadcasted_iota(jnp.int32, (1, block_s, 1), 1)
        xf = jnp.where((k * block_s + row) < seq_len, xf, 0.0)
    acc_ref[...] += jnp.sum(xf, axis=1)

    @pl.when(k == pl.num_programs(2) - 1)
    def _():
        o_ref[...] = (acc_ref[...] * inv_s).astype(o_ref.dtype)


def _choose_tiles(B: int, S: int, H: int, itemsize: int):
    """Pick (bB, bS, bH) tiles.

    Every block either equals the full array extent along that dim or satisfies the
    (8, 128) divisibility rule, so unaligned shapes work via partial boundary blocks
    (no host-side padding copy).
    """
    budget = 8 * 1024 * 1024  # per x buffer (double-buffered by the pipeline)

    # Hidden (lane) tile: keep it lane-dense; use the full extent when it fits.
    bH = H if H <= 1024 else 512

    # Batch tile: output-block sublane axis -> full extent (B <= 8) or a multiple of 8.
    if B <= 8:
        bB = B
    else:
        full_rows = budget // max(1, S * bH * itemsize)  # rows that fit with full S
        bB = max(8, min((B // 8) * 8, (full_rows // 8) * 8))

    # Sequence (reduction) tile: largest chunk keeping one x buffer around ~8 MiB.
    row_bytes = max(1, bB * bH * itemsize)
    max_s = budget // row_bytes
    if S <= max_s:
        bS = S
    else:
        bS = max(8, (max_s // 8) * 8)

    return bB, bS, bH


def avg_seq_reduce(x: jax.Array, mask: jax.Array | None = None) -> jax.Array:
    assert x.ndim == 3, f"Input sequence must be 3D, but got shape: {x.shape}"
    B, S, H = x.shape
    bB, bS, bH = _choose_tiles(B, S, H, x.dtype.itemsize)

    grid = (pl.cdiv(B, bB), pl.cdiv(H, bH), pl.cdiv(S, bS))  # reduction (S) axis last
    tail = (S % bS) != 0

    x_spec = pl.BlockSpec((bB, bS, bH), lambda i, j, k: (i, k, j))
    out_spec = pl.BlockSpec((bB, bH), lambda i, j, k: (i, j))  # ignores k -> resident
    scratch = [pltpu.VMEM((bB, bH), jnp.float32)]
    compiler_params = pltpu.CompilerParams(
        dimension_semantics=("parallel", "parallel", "arbitrary"),
        vmem_limit_bytes=48 * 1024 * 1024,
    )
    out_shape = jax.ShapeDtypeStruct((B, H), x.dtype)

    if mask is None:
        kernel = functools.partial(
            _unmasked_avg_kernel,
            inv_s=float(1.0 / S), seq_len=S, block_s=bS, tail=tail,
        )
        return pl.pallas_call(
            kernel,
            out_shape=out_shape,
            grid_spec=pltpu.PrefetchScalarGridSpec(
                num_scalar_prefetch=0,
                grid=grid,
                in_specs=[x_spec],
                out_specs=out_spec,
                scratch_shapes=scratch,
            ),
            compiler_params=compiler_params,
        )(x)

    # Mask laid out as (B, S, 1) in x's dtype: tiles exactly like x (S on sublanes),
    # broadcast over H inside the kernel is a lane splat (no cross-lane relayout).
    m3 = mask.astype(x.dtype).reshape(B, S, 1)
    # Per-row reciprocal count computed once, outside the hot loop.
    inv = 1.0 / jnp.sum(mask.astype(jnp.float32), axis=1, keepdims=True)

    m_spec = pl.BlockSpec((bB, bS, 1), lambda i, j, k: (i, k, 0))
    inv_spec = pl.BlockSpec((bB, 1), lambda i, j, k: (i, 0))
    kernel = functools.partial(_masked_avg_kernel, seq_len=S, block_s=bS, tail=tail)
    return pl.pallas_call(
        kernel,
        out_shape=out_shape,
        grid_spec=pltpu.PrefetchScalarGridSpec(
            num_scalar_prefetch=0,
            grid=grid,
            in_specs=[x_spec, m_spec, inv_spec],
            out_specs=out_spec,
            scratch_shapes=scratch,
        ),
        compiler_params=compiler_params,
    )(x, m3, inv)


if __name__ == "__main__":
    key = jax.random.PRNGKey(0)
    kx, km, kx2, km2, kx3, km3 = jax.random.split(key, 6)

    # Case 1: small shapes matching the module's 3-D (batch, seq, hidden) contract.
    B, S, H = 2, 8, 32
    x = jax.random.normal(kx, (B, S, H), dtype=jnp.float32)
    mask = jax.random.bernoulli(km, p=0.6, shape=(B, S))
    mask = mask.at[:, 0].set(True)  # every row keeps >= 1 position

    out_masked = jax.block_until_ready(avg_seq_reduce(x, mask))
    out_plain = jax.block_until_ready(avg_seq_reduce(x, None))

    m_f = mask.astype(jnp.float32)
    ref_masked = jnp.sum(x * m_f[:, :, None], axis=1) / jnp.sum(m_f, axis=1, keepdims=True)
    ref_plain = jnp.mean(x, axis=1)
    assert out_masked.shape == (B, H) and out_plain.shape == (B, H)
    assert jnp.allclose(out_masked, ref_masked, atol=1e-5, rtol=1e-5)
    assert jnp.allclose(out_plain, ref_plain, atol=1e-5, rtol=1e-5)

    # Case 2: single large block + bf16 inputs.
    B2, S2, H2 = 16, 40, 640
    x2 = jax.random.normal(kx2, (B2, S2, H2), dtype=jnp.float32).astype(jnp.bfloat16)
    mask2 = jax.random.bernoulli(km2, p=0.5, shape=(B2, S2))
    mask2 = mask2.at[:, 0].set(True)

    out2 = jax.block_until_ready(avg_seq_reduce(x2, mask2))
    out2u = jax.block_until_ready(avg_seq_reduce(x2, None))
    m2 = mask2.astype(jnp.float32)
    x2f = x2.astype(jnp.float32)
    ref2 = jnp.sum(x2f * m2[:, :, None], axis=1) / jnp.sum(m2, axis=1, keepdims=True)
    ref2u = jnp.mean(x2f, axis=1)
    assert out2.shape == (B2, H2) and out2u.shape == (B2, H2)
    assert jnp.allclose(out2.astype(jnp.float32), ref2, atol=2e-2, rtol=2e-2)
    assert jnp.allclose(out2u.astype(jnp.float32), ref2u, atol=2e-2, rtol=2e-2)

    # Case 3: unaligned shapes -> exercises partial boundary blocks on B and the
    # chunked S reduction with in-kernel tail masking (no host-side padding copy).
    B3, S3, H3 = 10, 300, 1024
    x3 = jax.random.normal(kx3, (B3, S3, H3), dtype=jnp.float32)
    mask3 = jax.random.bernoulli(km3, p=0.7, shape=(B3, S3))
    mask3 = mask3.at[:, 0].set(True)

    out3 = jax.block_until_ready(avg_seq_reduce(x3, mask3))
    out3u = jax.block_until_ready(avg_seq_reduce(x3, None))
    m3f = mask3.astype(jnp.float32)
    ref3 = jnp.sum(x3 * m3f[:, :, None], axis=1) / jnp.sum(m3f, axis=1, keepdims=True)
    ref3u = jnp.mean(x3, axis=1)
    assert out3.shape == (B3, H3) and out3u.shape == (B3, H3)
    assert jnp.allclose(out3, ref3, atol=1e-4, rtol=1e-4)
    assert jnp.allclose(out3u, ref3u, atol=1e-4, rtol=1e-4)

    print("KERNEL_OK")
</pallas_src>

<mosaic_0001>
module attributes {stable_mosaic.version = 11 : i64} {
  func.func @_masked_avg_kernel(%arg0: i32, %arg1: i32, %arg2: i32, %arg3: memref<2x8x32xf32, #tpu.memory_space<vmem>>, %arg4: memref<2x8x1xf32, #tpu.memory_space<vmem>>, %arg5: memref<2x1xf32, #tpu.memory_space<vmem>>, %arg6: memref<2x32xf32, #tpu.memory_space<vmem>>, %arg7: memref<2x32xf32, #tpu.memory_space<vmem>>) attributes {dimension_semantics = [#tpu.dimension_semantics<parallel>, #tpu.dimension_semantics<parallel>, #tpu.dimension_semantics<arbitrary>], iteration_bounds = array<i64: 1, 1, 1>, scalar_prefetch = 0 : i64, scratch_operands = 1 : i64, tpu.core_type = #tpu.core_type<tc>, window_params = [{transform_indices = @transform_0, window_bounds = array<i64: 2, 8, 32>}, {transform_indices = @transform_1, window_bounds = array<i64: 2, 8, 1>}, {transform_indices = @transform_2, window_bounds = array<i64: 2, 1>}, {transform_indices = @transform_3, window_bounds = array<i64: 2, 32>}]} {
    %c0_i32 = arith.constant 0 : i32
    %0 = arith.cmpi eq, %arg2, %c0_i32 : i32
    %1 = arith.extui %0 : i1 to i32
    %c0_i32_0 = arith.constant 0 : i32
    %2 = arith.cmpi ne, %1, %c0_i32_0 : i32
    scf.if %2 {
      %cst_12 = arith.constant 0.000000e+00 : f32
      %14 = vector.broadcast %cst_12 : f32 to vector<2x32xf32>
      %c0_13 = arith.constant 0 : index
      %c0_14 = arith.constant 0 : index
      %15 = vector.load %arg7[%c0_13, %c0_14] : memref<2x32xf32, #tpu.memory_space<vmem>>, vector<2x32xf32>
      tpu.vector_store %arg7[%c0_13, %c0_14], %14 {strides = array<i32>} : memref<2x32xf32, #tpu.memory_space<vmem>>, vector<2x32xf32>,
    } else {
    }
    %c0 = arith.constant 0 : index
    %c0_1 = arith.constant 0 : index
    %c0_2 = arith.constant 0 : index
    %3 = vector.load %arg3[%c0, %c0_1, %c0_2] : memref<2x8x32xf32, #tpu.memory_space<vmem>>, vector<2x8x32xf32>
    %c0_3 = arith.constant 0 : index
    %c0_4 = arith.constant 0 : index
    %c0_5 = arith.constant 0 : index
    %4 = vector.load %arg4[%c0_3, %c0_4, %c0_5] : memref<2x8x1xf32, #tpu.memory_space<vmem>>, vector<2x8x1xf32>
    %5 = vector.broadcast %4 : vector<2x8x1xf32> to vector<2x8x32xf32>
    %6 = arith.mulf %3, %5 : vector<2x8x32xf32>
    %c0_6 = arith.constant 0 : index
    %c0_7 = arith.constant 0 : index
    %7 = vector.load %arg7[%c0_6, %c0_7] : memref<2x32xf32, #tpu.memory_space<vmem>>, vector<2x32xf32>
    %cst = arith.constant dense<0.000000e+00> : vector<2x32xf32>
    %8 = vector.multi_reduction <add>, %6, %cst [1] : vector<2x8x32xf32> to vector<2x32xf32>
    %9 = arith.addf %7, %8 : vector<2x32xf32>
    %c0_8 = arith.constant 0 : index
    %c0_9 = arith.constant 0 : index
    %10 = vector.load %arg7[%c0_8, %c0_9] : memref<2x32xf32, #tpu.memory_space<vmem>>, vector<2x32xf32>
    tpu.vector_store %arg7[%c0_8, %c0_9], %9 {strides = array<i32>} : memref<2x32xf32, #tpu.memory_space<vmem>>, vector<2x32xf32>,
    %c0_i32_10 = arith.constant 0 : i32
    %11 = arith.cmpi eq, %arg2, %c0_i32_10 : i32
    %12 = arith.extui %11 : i1 to i32
    %c0_i32_11 = arith.constant 0 : i32
    %13 = arith.cmpi ne, %12, %c0_i32_11 : i32
    scf.if %13 {
      %c0_12 = arith.constant 0 : index
      %c0_13 = arith.constant 0 : index
      %14 = vector.load %arg7[%c0_12, %c0_13] : memref<2x32xf32, #tpu.memory_space<vmem>>, vector<2x32xf32>
      %c0_14 = arith.constant 0 : index
      %c0_15 = arith.constant 0 : index
      %15 = vector.load %arg5[%c0_14, %c0_15] : memref<2x1xf32, #tpu.memory_space<vmem>>, vector<2x1xf32>
      %16 = vector.broadcast %15 : vector<2x1xf32> to vector<2x32xf32>
      %17 = arith.mulf %14, %16 : vector<2x32xf32>
      %c0_16 = arith.constant 0 : index
      %c0_17 = arith.constant 0 : index
      %18 = vector.load %arg6[%c0_16, %c0_17] : memref<2x32xf32, #tpu.memory_space<vmem>>, vector<2x32xf32>
      tpu.vector_store %arg6[%c0_16, %c0_17], %17 {strides = array<i32>} : memref<2x32xf32, #tpu.memory_space<vmem>>, vector<2x32xf32>,
    } else {
    }
    return
  }
  func.func @transform_0(%arg0: i32, %arg1: i32, %arg2: i32) -> (i32, i32, i32) {
    %c0_i32 = arith.constant 0 : i32
    return %arg0, %arg2, %arg1 : i32, i32, i32
  }
  func.func @transform_1(%arg0: i32, %arg1: i32, %arg2: i32) -> (i32, i32, i32) {
    %c0_i32 = arith.constant 0 : i32
    %c0_i32_0 = arith.constant 0 : i32
    return %arg0, %arg2, %c0_i32 : i32, i32, i32
  }
  func.func @transform_2(%arg0: i32, %arg1: i32, %arg2: i32) -> (i32, i32) {
    %c0_i32 = arith.constant 0 : i32
    %c0_i32_0 = arith.constant 0 : i32
    return %arg0, %c0_i32 : i32, i32
  }
  func.func @transform_3(%arg0: i32, %arg1: i32, %arg2: i32) -> (i32, i32) {
    %c0_i32 = arith.constant 0 : i32
    return %arg0, %arg1 : i32, i32
  }
}

</mosaic_0001>

<bundles_post_ra>
// kernel: tpu_custom_call.1
= control target key start
LH: loop header
LB: loop body
LE: loop exit
PB: predicated region body
PF: predicated region fallthrough
CT: control target
= control target key end

     0   :  { %v114_v2 = vmov 0   ;;  %s158_s0 = inlined_call_operand.vmem [shape: f32[2,8,32], index: 0, kind: input, shape index: {}]   ;;  %s159_s1 = inlined_call_operand.vmem [shape: f32[2,8,1], index: 1, kind: input, shape index: {}]   ;;  %s160_s2 = inlined_call_operand.vmem [shape: f32[2,1], index: 2, kind: input, shape index: {}]   ;;  %s161_s3 = inlined_call_operand.hbm [shape: f32[2,32], index: 3, kind: output, shape index: {}]  }
   0x1   :  { %v23_v0 = vld [vmem:[%s159_s1] sm:$0xff]  ;;  %90 = vset.pattern.permute.xlu0 %v114_v2  ;;  %91 = vset.pattern.permute.xlu1 %v114_v2 }
   0x2   :  { %v65_v1 = vld [vmem:[%s160_s2] sm:$0x3] }
   0x3   :  { %8 = vsyncpa [#allocation4], 0  ;;  %27 = vperm.xlu0 %90, %v23_v0   ;;  %68 = vperm.xlu1 %91, %v65_v1   ;;  %v24_v3 = vld [vmem:[%s159_s1 + $0x8] sm:$0xff]  ;;  %vm19_vm0 = vcmask 254976   ;;  %v115_v4 = vmov 0.0   ;;  %v21_v5 = vld [vmem:[%s158_s0] sm:$0xff] }
   0x4   :  { %20 = vst.msk [vmem:[#allocation2] sm:$0x3] %vm19_vm0, %v115_v4  ;;  %vm38_vm1 = vcmask 261120   ;;  %v22_v8 = vld [vmem:[%s158_s0 + $0x8] sm:$0xff]  ;;  %vm55_vm2 = vcmask 1041409   ;;  %s116_s0 = smov [#allocation3]  }
   0x5   :  { %s79_s1 = sshll.u32 %s116_s0, 4  ;;  %s80_s1 = int_to_ptr.vmem [resolvable:$true] %s79_s1 }
   0x6   :  { %s92_s21 = scalar_lea.vmem %s80_s1, 32  ;;  %p97_p1 = scmp.lt.s32.totalorder %s80_s1, %s80_s1 }
   0x7   :  { %32 = vperm.xlu0 %90, %v24_v3   ;;  %p93_p0 = scmp.ne.s32.totalorder %s80_s1, %s92_s21  ;;  %p98_p2 = scmp.lt.s32.totalorder %s92_s21, %s92_s21 }
   0x9   :  { %p99_p3 = por %p98_p2, %p97_p1 }
   0xb   :  { %v37_v25 = vld [vmem:[#allocation2] sm:$0x3]  ;;  %p100_p4 = pnand %p99_p3, %p93_p0 }
  0x7e   :  { %v28_v6 = vpop.permute.xlu0 %27  ;;  %v69_v28 = vpop.permute.xlu1 %68 }
  0x7f   :  { %v35_v7 = vmul.f32 %v28_v6, %v21_v5 }
  0x81   :  { %v39_v9 = vsel %vm38_vm1, %v35_v7, 0.0 }
  0x82   :  { %v40_v10 = vrot.slane %v39_v9, 4  ;;  %v33_v11 = vpop.permute.xlu0 %32 }
  0x83   :  { %v36_v12 = vmul.f32 %v33_v11, %v22_v8 }
  0x84   :  { %v41_v13 = vadd.f32 %v40_v10, %v39_v9 }
  0x85   :  { %v46_v14 = vsel %vm38_vm1, %v36_v12, 0.0 }
  0x86   :  { %v42_v15 = vrot.slane %v41_v13, 2  ;;  %v47_v16 = vrot.slane %v46_v14, 4 }
  0x88   :  { %v43_v17 = vadd.f32 %v42_v15, %v41_v13  ;;  %v48_v18 = vadd.f32 %v47_v16, %v46_v14 }
  0x8a   :  { %v49_v19 = vrot.slane %v48_v18, 2  ;;  %v44_v20 = vrot.slane %v43_v17, 1 }
  0x8c   :  { %v50_v21 = vadd.f32 %v49_v19, %v48_v18  ;;  %v45_v23 = vadd.f32 %v44_v20, %v43_v17 }
  0x8e   :  { %v51_v22 = vrot.slane %v50_v21, 1 }
  0x90   :  { %v52_v24 = vadd.f32 %v51_v22, %v50_v21 }
  0x92   :  { %v56_v26 = vsel %vm55_vm2, %v52_v24, %v45_v23 }
  0x93   :  { %v58_v27 = vadd.f32 %v56_v26, %v37_v25 }
  0x95   :  { %60 = vst.msk [vmem:[#allocation2] sm:$0x3] %vm19_vm0, %v58_v27 }
  0x9c   :  { %v64_v29 = vld [vmem:[#allocation2] sm:$0x3] }
  0x9d   :  { %v71_v30 = vmul.f32 %v69_v28, %v64_v29 }
  0x9f   :  { %72 = vst.msk [vmem:[#allocation3] sm:$0x3] %vm19_vm0, %v71_v30 }
  0xa0   :  { %103 = shalt.err (!%p100_p4)
}
  0xa1   :  { %82 = dma.vmem_to_hbm [thread:$0]  %s80_s1, 32, %s161_s3, [#allocation4]  }
  0xa2   :  { %112 = dma.done.wait [#allocation4], 32  }
  0xa3   :  { %113 = vsyncadd [#allocation4], 4294967264 }
  0xa4   :  { %86 = vsyncpa [#allocation4], 1 }

</bundles_post_ra>
